<compile_context>
chip_gen: v5e
topology: v5e:2x2
jax: 0.10.0
libtpu: 0.0.40
codegen_flags: <defaults>
</compile_context>

<pallas_src>
import functools
import math

import jax
import jax.numpy as jnp
from jax import lax
from jax.experimental import pallas as pl
from jax.experimental.pallas import tpu as pltpu


# ---------------------------------------------------------------------------
# Fused Pallas kernel: one grid step == one batch element, all heads.
# ---------------------------------------------------------------------------
def _fused_sdpa_kernel(q_ref, k_ref, v_ref,
                       wq_ref, bq_ref, wk_ref, bk_ref, wv_ref, bv_ref,
                       wo_ref, bo_ref,
                       o_ref, *, h, compute_dtype):
    # Contract x's last dim with w's last dim (x @ W^T) -- no transposed weights materialized.
    dn_t = (((1,), (1,)), ((), ()))
    cdt = compute_dtype

    nq = o_ref.shape[1]
    d_model = o_ref.shape[2]

    xq = q_ref[0].astype(cdt)   # (nq, d_model)
    xk = k_ref[0].astype(cdt)   # (nk, d_model)
    xv = v_ref[0].astype(cdt)   # (nk, d_model)

    def head_body(hh, o_acc):
        # Per-head weight slabs, sliced along the (sublane/major) head axis -- layout-free.
        qh = lax.dot_general(xq, wq_ref[hh], dn_t,
                             preferred_element_type=jnp.float32) + bq_ref[hh]   # (nq, d_k)
        kh = lax.dot_general(xk, wk_ref[hh], dn_t,
                             preferred_element_type=jnp.float32) + bk_ref[hh]   # (nk, d_k)
        vh = lax.dot_general(xv, wv_ref[hh], dn_t,
                             preferred_element_type=jnp.float32) + bv_ref[hh]   # (nk, d_v)

        # Scores: 'qd,kd->qk' fed straight to the MXU (scale already folded into wq/bq).
        s = lax.dot_general(qh.astype(cdt), kh.astype(cdt), dn_t,
                            preferred_element_type=jnp.float32)                  # (nq, nk)

        # Numerically stable softmax, all f32 (VPU/EUP).
        s = s - jnp.max(s, axis=-1, keepdims=True)
        p = jnp.exp(s)
        p = p * pl.reciprocal(jnp.sum(p, axis=-1, keepdims=True), approx=True)

        head_out = jnp.dot(p.astype(cdt), vh.astype(cdt),
                           preferred_element_type=jnp.float32)                   # (nq, d_v)

        # Per-head output projection accumulated in f32: no lane-axis concatenate, no
        # (nq, h*d_v) intermediate.  wo_ref[hh] is (d_v, d_model).
        return o_acc + jnp.dot(head_out.astype(cdt), wo_ref[hh],
                               preferred_element_type=jnp.float32)

    o_acc = jnp.zeros((nq, d_model), jnp.float32)
    o_acc = lax.fori_loop(0, h, head_body, o_acc, unroll=True)
    o_ref[0] = o_acc + bo_ref[...]


# ---------------------------------------------------------------------------
# Parameters (torch nn.Linear conventions) + one-time kernel-layout transform
# ---------------------------------------------------------------------------
def xavier_uniform(key, shape):
    fan_out, fan_in = shape  # torch nn.Linear weight: (d_out, d_in)
    bound = math.sqrt(6.0 / (fan_in + fan_out))
    return jax.random.uniform(key, shape, jnp.float32, -bound, bound)


def init_params(key, d_model, d_k, d_v, h):
    ks = jax.random.split(key, 4)
    return {
        "wq": xavier_uniform(ks[0], (h * d_k, d_model)),
        "bq": jnp.zeros((1, h * d_k), jnp.float32),
        "wk": xavier_uniform(ks[1], (h * d_k, d_model)),
        "bk": jnp.zeros((1, h * d_k), jnp.float32),
        "wv": xavier_uniform(ks[2], (h * d_v, d_model)),
        "bv": jnp.zeros((1, h * d_v), jnp.float32),
        "wo": xavier_uniform(ks[3], (d_model, h * d_v)),
        "bo": jnp.zeros((1, d_model), jnp.float32),
    }


def prepare_params(params, d_k, d_v, h, compute_dtype=jnp.bfloat16):
    """One-time transform: fold 1/sqrt(d_k) into wq/bq, reshape weights into per-head slabs,
    cast weights to the matmul compute dtype (biases stay f32)."""
    d_model = params["wq"].shape[1]
    scale = 1.0 / math.sqrt(d_k)
    return {
        "wq": (params["wq"] * scale).reshape(h, d_k, d_model).astype(compute_dtype),
        "bq": (params["bq"] * scale).reshape(h, 1, d_k).astype(jnp.float32),
        "wk": params["wk"].reshape(h, d_k, d_model).astype(compute_dtype),
        "bk": params["bk"].reshape(h, 1, d_k).astype(jnp.float32),
        "wv": params["wv"].reshape(h, d_v, d_model).astype(compute_dtype),
        "bv": params["bv"].reshape(h, 1, d_v).astype(jnp.float32),
        # fc_o weight (d_model, h*d_v): per-head slab wo_h = W_o[:, h_slice]^T -> (d_v, d_model)
        "wo": params["wo"].reshape(d_model, h, d_v).transpose(1, 2, 0).astype(compute_dtype),
        "bo": params["bo"].reshape(1, d_model).astype(jnp.float32),
    }


# ---------------------------------------------------------------------------
# Forward wrapper
# ---------------------------------------------------------------------------
def scaled_dot_product_attention(prep, queries, keys, values, h):
    """queries: (b_s, nq, d_model); keys/values: (b_s, nk, d_model). `prep` from prepare_params."""
    b_s, nq, d_model = queries.shape
    nk = keys.shape[1]
    d_k = prep["wq"].shape[1]
    d_v = prep["wv"].shape[1]
    compute_dtype = prep["wq"].dtype

    kern = functools.partial(_fused_sdpa_kernel, h=h, compute_dtype=compute_dtype)

    def full_spec(arr):
        # Whole-array block, same block every grid step (stays resident in VMEM).
        return pl.BlockSpec(arr.shape, lambda b: (0,) * arr.ndim)

    flops = 2 * b_s * (nq * d_model * h * d_k            # Q projection
                       + nk * d_model * h * (d_k + d_v)  # K, V projections
                       + h * nq * nk * (d_k + d_v)       # QK^T and PV
                       + nq * h * d_v * d_model)         # output projection
    bytes_accessed = int(
        4 * (queries.size + keys.size + values.size + b_s * nq * d_model)
        + sum(p.size * p.dtype.itemsize for p in prep.values()))
    cost = pl.CostEstimate(flops=flops,
                           transcendentals=b_s * h * nq * nk,
                           bytes_accessed=bytes_accessed)

    return pl.pallas_call(
        kern,
        out_shape=jax.ShapeDtypeStruct((b_s, nq, d_model), jnp.float32),
        grid=(b_s,),
        in_specs=[
            pl.BlockSpec((1, nq, d_model), lambda b: (b, 0, 0)),
            pl.BlockSpec((1, nk, d_model), lambda b: (b, 0, 0)),
            pl.BlockSpec((1, nk, d_model), lambda b: (b, 0, 0)),
            full_spec(prep["wq"]), full_spec(prep["bq"]),
            full_spec(prep["wk"]), full_spec(prep["bk"]),
            full_spec(prep["wv"]), full_spec(prep["bv"]),
            full_spec(prep["wo"]), full_spec(prep["bo"]),
        ],
        out_specs=pl.BlockSpec((1, nq, d_model), lambda b: (b, 0, 0)),
        compiler_params=pltpu.CompilerParams(dimension_semantics=("parallel",)),
        cost_estimate=cost,
    )(queries, keys, values,
      prep["wq"], prep["bq"], prep["wk"], prep["bk"],
      prep["wv"], prep["bv"], prep["wo"], prep["bo"])


# ---------------------------------------------------------------------------
# Pure-JAX reference (mirrors the torch module's forward, f32 throughout)
# ---------------------------------------------------------------------------
def ref_forward(params, queries, keys, values, d_k, d_v, h):
    b_s, nq, _ = queries.shape
    nk = keys.shape[1]
    q = queries @ params["wq"].T + params["bq"]
    k = keys @ params["wk"].T + params["bk"]
    v = values @ params["wv"].T + params["bv"]
    q = q.reshape(b_s, nq, h, d_k).transpose(0, 2, 1, 3)
    k = k.reshape(b_s, nk, h, d_k).transpose(0, 2, 3, 1)
    v = v.reshape(b_s, nk, h, d_v).transpose(0, 2, 1, 3)
    att = (q @ k) / math.sqrt(d_k)
    att = jax.nn.softmax(att, axis=-1)
    o = (att @ v).transpose(0, 2, 1, 3).reshape(b_s, nq, h * d_v)
    return o @ params["wo"].T + params["bo"]


# ---------------------------------------------------------------------------
if __name__ == "__main__":
    d_model, d_k, d_v, h = 32, 16, 16, 4
    b_s, nq, nk = 2, 8, 8

    key = jax.random.PRNGKey(0)
    kp, kq, kk, kv = jax.random.split(key, 4)
    params = init_params(kp, d_model, d_k, d_v, h)

    queries = jax.random.normal(kq, (b_s, nq, d_model), jnp.float32)
    keys = jax.random.normal(kk, (b_s, nk, d_model), jnp.float32)
    values = jax.random.normal(kv, (b_s, nk, d_model), jnp.float32)

    ref = ref_forward(params, queries, keys, values, d_k, d_v, h)

    # (1) f32-operand path: tight agreement with the torch-equivalent reference
    #     (small tolerance slack for the approximate EUP reciprocal in the softmax denominator).
    prep_f32 = prepare_params(params, d_k, d_v, h, compute_dtype=jnp.float32)
    out_f32 = jax.block_until_ready(
        scaled_dot_product_attention(prep_f32, queries, keys, values, h))
    assert jnp.allclose(out_f32, ref, atol=2e-3, rtol=2e-3), \
        float(jnp.max(jnp.abs(out_f32 - ref)))

    # (2) default bf16-operand path (f32 accumulation): compared against the f32 reference with a
    #     tolerance appropriate for bf16 operand rounding.
    prep_bf16 = prepare_params(params, d_k, d_v, h)  # bf16 weights / matmul operands
    out_bf16 = jax.block_until_ready(
        scaled_dot_product_attention(prep_bf16, queries, keys, values, h))
    assert jnp.allclose(out_bf16, ref, atol=1e-1, rtol=1e-1), \
        float(jnp.max(jnp.abs(out_bf16 - ref)))

    print("KERNEL_OK")
</pallas_src>

<mosaic_0001>
module attributes {stable_mosaic.version = 11 : i64} {
  func.func @_fused_sdpa_kernel(%arg0: i32, %arg1: memref<1x8x32xf32, #tpu.memory_space<vmem>>, %arg2: memref<1x8x32xf32, #tpu.memory_space<vmem>>, %arg3: memref<1x8x32xf32, #tpu.memory_space<vmem>>, %arg4: memref<4x16x32xf32, #tpu.memory_space<vmem>>, %arg5: memref<4x1x16xf32, #tpu.memory_space<vmem>>, %arg6: memref<4x16x32xf32, #tpu.memory_space<vmem>>, %arg7: memref<4x1x16xf32, #tpu.memory_space<vmem>>, %arg8: memref<4x16x32xf32, #tpu.memory_space<vmem>>, %arg9: memref<4x1x16xf32, #tpu.memory_space<vmem>>, %arg10: memref<4x16x32xf32, #tpu.memory_space<vmem>>, %arg11: memref<1x32xf32, #tpu.memory_space<vmem>>, %arg12: memref<1x8x32xf32, #tpu.memory_space<vmem>>) attributes {dimension_semantics = [#tpu.dimension_semantics<parallel>], iteration_bounds = array<i64: 2>, scalar_prefetch = 0 : i64, scratch_operands = 0 : i64, tpu.core_type = #tpu.core_type<tc>, window_params = [{transform_indices = @transform_0, window_bounds = array<i64: 1, 8, 32>}, {transform_indices = @transform_1, window_bounds = array<i64: 1, 8, 32>}, {transform_indices = @transform_2, window_bounds = array<i64: 1, 8, 32>}, {pipeline_mode = #tpu.pipeline_mode<synchronous>, transform_indices = @transform_3, window_bounds = array<i64: 4, 16, 32>}, {pipeline_mode = #tpu.pipeline_mode<synchronous>, transform_indices = @transform_4, window_bounds = array<i64: 4, 1, 16>}, {pipeline_mode = #tpu.pipeline_mode<synchronous>, transform_indices = @transform_5, window_bounds = array<i64: 4, 16, 32>}, {pipeline_mode = #tpu.pipeline_mode<synchronous>, transform_indices = @transform_6, window_bounds = array<i64: 4, 1, 16>}, {pipeline_mode = #tpu.pipeline_mode<synchronous>, transform_indices = @transform_7, window_bounds = array<i64: 4, 16, 32>}, {pipeline_mode = #tpu.pipeline_mode<synchronous>, transform_indices = @transform_8, window_bounds = array<i64: 4, 1, 16>}, {pipeline_mode = #tpu.pipeline_mode<synchronous>, transform_indices = @transform_9, window_bounds = array<i64: 4, 16, 32>}, {pipeline_mode = #tpu.pipeline_mode<synchronous>, transform_indices = @transform_10, window_bounds = array<i64: 1, 32>}, {transform_indices = @transform_11, window_bounds = array<i64: 1, 8, 32>}]} {
    %c0 = arith.constant 0 : index
    %c0_0 = arith.constant 0 : index
    %c0_1 = arith.constant 0 : index
    %0 = vector.load %arg1[%c0, %c0_0, %c0_1] : memref<1x8x32xf32, #tpu.memory_space<vmem>>, vector<1x8x32xf32>
    %1 = vector.shape_cast %0 : vector<1x8x32xf32> to vector<8x32xf32>
    %c0_2 = arith.constant 0 : index
    %c0_3 = arith.constant 0 : index
    %c0_4 = arith.constant 0 : index
    %2 = vector.load %arg2[%c0_2, %c0_3, %c0_4] : memref<1x8x32xf32, #tpu.memory_space<vmem>>, vector<1x8x32xf32>
    %3 = vector.shape_cast %2 : vector<1x8x32xf32> to vector<8x32xf32>
    %c0_5 = arith.constant 0 : index
    %c0_6 = arith.constant 0 : index
    %c0_7 = arith.constant 0 : index
    %4 = vector.load %arg3[%c0_5, %c0_6, %c0_7] : memref<1x8x32xf32, #tpu.memory_space<vmem>>, vector<1x8x32xf32>
    %5 = vector.shape_cast %4 : vector<1x8x32xf32> to vector<8x32xf32>
    %cst = arith.constant 0.000000e+00 : f32
    %6 = vector.broadcast %cst : f32 to vector<8x32xf32>
    %c0_i32 = arith.constant 0 : i32
    %7 = arith.index_cast %c0_i32 : i32 to index
    %c0_8 = arith.constant 0 : index
    %c0_9 = arith.constant 0 : index
    %8 = vector.load %arg4[%7, %c0_8, %c0_9] : memref<4x16x32xf32, #tpu.memory_space<vmem>>, vector<1x16x32xf32>
    %9 = vector.shape_cast %8 : vector<1x16x32xf32> to vector<16x32xf32>
    %cst_10 = arith.constant dense<0.000000e+00> : vector<8x16xf32>
    %10 = tpu.matmul %1, %9, %cst_10 {dimension_numbers = #tpu.dot_dimension_numbers<[1], [1], [0], [0], [0, 0, 1, 0], [], []>} : vector<8x32xf32>, vector<16x32xf32>, vector<8x16xf32> -> vector<8x16xf32>
    %11 = arith.index_cast %c0_i32 : i32 to index
    %c0_11 = arith.constant 0 : index
    %c0_12 = arith.constant 0 : index
    %12 = vector.load %arg5[%11, %c0_11, %c0_12] : memref<4x1x16xf32, #tpu.memory_space<vmem>>, vector<1x1x16xf32>
    %13 = vector.shape_cast %12 : vector<1x1x16xf32> to vector<1x16xf32>
    %14 = vector.broadcast %13 : vector<1x16xf32> to vector<8x16xf32>
    %15 = arith.addf %10, %14 : vector<8x16xf32>
    %16 = arith.index_cast %c0_i32 : i32 to index
    %c0_13 = arith.constant 0 : index
    %c0_14 = arith.constant 0 : index
    %17 = vector.load %arg6[%16, %c0_13, %c0_14] : memref<4x16x32xf32, #tpu.memory_space<vmem>>, vector<1x16x32xf32>
    %18 = vector.shape_cast %17 : vector<1x16x32xf32> to vector<16x32xf32>
    %cst_15 = arith.constant dense<0.000000e+00> : vector<8x16xf32>
    %19 = tpu.matmul %3, %18, %cst_15 {dimension_numbers = #tpu.dot_dimension_numbers<[1], [1], [0], [0], [0, 0, 1, 0], [], []>} : vector<8x32xf32>, vector<16x32xf32>, vector<8x16xf32> -> vector<8x16xf32>
    %20 = arith.index_cast %c0_i32 : i32 to index
    %c0_16 = arith.constant 0 : index
    %c0_17 = arith.constant 0 : index
    %21 = vector.load %arg7[%20, %c0_16, %c0_17] : memref<4x1x16xf32, #tpu.memory_space<vmem>>, vector<1x1x16xf32>
    %22 = vector.shape_cast %21 : vector<1x1x16xf32> to vector<1x16xf32>
    %23 = vector.broadcast %22 : vector<1x16xf32> to vector<8x16xf32>
    %24 = arith.addf %19, %23 : vector<8x16xf32>
    %25 = arith.index_cast %c0_i32 : i32 to index
    %c0_18 = arith.constant 0 : index
    %c0_19 = arith.constant 0 : index
    %26 = vector.load %arg8[%25, %c0_18, %c0_19] : memref<4x16x32xf32, #tpu.memory_space<vmem>>, vector<1x16x32xf32>
    %27 = vector.shape_cast %26 : vector<1x16x32xf32> to vector<16x32xf32>
    %cst_20 = arith.constant dense<0.000000e+00> : vector<8x16xf32>
    %28 = tpu.matmul %5, %27, %cst_20 {dimension_numbers = #tpu.dot_dimension_numbers<[1], [1], [0], [0], [0, 0, 1, 0], [], []>} : vector<8x32xf32>, vector<16x32xf32>, vector<8x16xf32> -> vector<8x16xf32>
    %29 = arith.index_cast %c0_i32 : i32 to index
    %c0_21 = arith.constant 0 : index
    %c0_22 = arith.constant 0 : index
    %30 = vector.load %arg9[%29, %c0_21, %c0_22] : memref<4x1x16xf32, #tpu.memory_space<vmem>>, vector<1x1x16xf32>
    %31 = vector.shape_cast %30 : vector<1x1x16xf32> to vector<1x16xf32>
    %32 = vector.broadcast %31 : vector<1x16xf32> to vector<8x16xf32>
    %33 = arith.addf %28, %32 : vector<8x16xf32>
    %cst_23 = arith.constant dense<0.000000e+00> : vector<8x8xf32>
    %34 = tpu.matmul %15, %24, %cst_23 {dimension_numbers = #tpu.dot_dimension_numbers<[1], [1], [0], [0], [0, 0, 1, 0], [], []>} : vector<8x16xf32>, vector<8x16xf32>, vector<8x8xf32> -> vector<8x8xf32>
    %cst_24 = arith.constant dense<0xFF800000> : vector<8xf32>
    %35 = vector.multi_reduction <maximumf>, %34, %cst_24 [1] : vector<8x8xf32> to vector<8xf32>
    %36 = vector.shape_cast %35 : vector<8xf32> to vector<8x1xf32>
    %37 = vector.broadcast %36 : vector<8x1xf32> to vector<8x8xf32>
    %38 = arith.subf %34, %37 : vector<8x8xf32>
    %39 = math.exp %38 : vector<8x8xf32>
    %cst_25 = arith.constant dense<0.000000e+00> : vector<8xf32>
    %40 = vector.multi_reduction <add>, %39, %cst_25 [1] : vector<8x8xf32> to vector<8xf32>
    %41 = vector.shape_cast %40 : vector<8xf32> to vector<8x1xf32>
    %42 = tpu.reciprocal %41 {approx = true} : vector<8x1xf32> -> vector<8x1xf32>
    %43 = vector.broadcast %42 : vector<8x1xf32> to vector<8x8xf32>
    %44 = arith.mulf %39, %43 : vector<8x8xf32>
    %cst_26 = arith.constant dense<0.000000e+00> : vector<8x16xf32>
    %45 = tpu.matmul %44, %33, %cst_26 {dimension_numbers = #tpu.dot_dimension_numbers<[1], [0], [0], [1], [0, 0, 1, 1], [], []>} : vector<8x8xf32>, vector<8x16xf32>, vector<8x16xf32> -> vector<8x16xf32>
    %46 = arith.index_cast %c0_i32 : i32 to index
    %c0_27 = arith.constant 0 : index
    %c0_28 = arith.constant 0 : index
    %47 = vector.load %arg10[%46, %c0_27, %c0_28] : memref<4x16x32xf32, #tpu.memory_space<vmem>>, vector<1x16x32xf32>
    %48 = vector.shape_cast %47 : vector<1x16x32xf32> to vector<16x32xf32>
    %cst_29 = arith.constant dense<0.000000e+00> : vector<8x32xf32>
    %49 = tpu.matmul %45, %48, %cst_29 {dimension_numbers = #tpu.dot_dimension_numbers<[1], [0], [0], [1], [0, 0, 1, 1], [], []>} : vector<8x16xf32>, vector<16x32xf32>, vector<8x32xf32> -> vector<8x32xf32>
    %50 = arith.addf %6, %49 : vector<8x32xf32>
    %c1_i32 = arith.constant 1 : i32
    %51 = arith.index_cast %c1_i32 : i32 to index
    %c0_30 = arith.constant 0 : index
    %c0_31 = arith.constant 0 : index
    %52 = vector.load %arg4[%51, %c0_30, %c0_31] : memref<4x16x32xf32, #tpu.memory_space<vmem>>, vector<1x16x32xf32>
    %53 = vector.shape_cast %52 : vector<1x16x32xf32> to vector<16x32xf32>
    %cst_32 = arith.constant dense<0.000000e+00> : vector<8x16xf32>
    %54 = tpu.matmul %1, %53, %cst_32 {dimension_numbers = #tpu.dot_dimension_numbers<[1], [1], [0], [0], [0, 0, 1, 0], [], []>} : vector<8x32xf32>, vector<16x32xf32>, vector<8x16xf32> -> vector<8x16xf32>
    %55 = arith.index_cast %c1_i32 : i32 to index
    %c0_33 = arith.constant 0 : index
    %c0_34 = arith.constant 0 : index
    %56 = vector.load %arg5[%55, %c0_33, %c0_34] : memref<4x1x16xf32, #tpu.memory_space<vmem>>, vector<1x1x16xf32>
    %57 = vector.shape_cast %56 : vector<1x1x16xf32> to vector<1x16xf32>
    %58 = vector.broadcast %57 : vector<1x16xf32> to vector<8x16xf32>
    %59 = arith.addf %54, %58 : vector<8x16xf32>
    %60 = arith.index_cast %c1_i32 : i32 to index
    %c0_35 = arith.constant 0 : index
    %c0_36 = arith.constant 0 : index
    %61 = vector.load %arg6[%60, %c0_35, %c0_36] : memref<4x16x32xf32, #tpu.memory_space<vmem>>, vector<1x16x32xf32>
    %62 = vector.shape_cast %61 : vector<1x16x32xf32> to vector<16x32xf32>
    %cst_37 = arith.constant dense<0.000000e+00> : vector<8x16xf32>
    %63 = tpu.matmul %3, %62, %cst_37 {dimension_numbers = #tpu.dot_dimension_numbers<[1], [1], [0], [0], [0, 0, 1, 0], [], []>} : vector<8x32xf32>, vector<16x32xf32>, vector<8x16xf32> -> vector<8x16xf32>
    %64 = arith.index_cast %c1_i32 : i32 to index
    %c0_38 = arith.constant 0 : index
    %c0_39 = arith.constant 0 : index
    %65 = vector.load %arg7[%64, %c0_38, %c0_39] : memref<4x1x16xf32, #tpu.memory_space<vmem>>, vector<1x1x16xf32>
    %66 = vector.shape_cast %65 : vector<1x1x16xf32> to vector<1x16xf32>
    %67 = vector.broadcast %66 : vector<1x16xf32> to vector<8x16xf32>
    %68 = arith.addf %63, %67 : vector<8x16xf32>
    %69 = arith.index_cast %c1_i32 : i32 to index
    %c0_40 = arith.constant 0 : index
    %c0_41 = arith.constant 0 : index
    %70 = vector.load %arg8[%69, %c0_40, %c0_41] : memref<4x16x32xf32, #tpu.memory_space<vmem>>, vector<1x16x32xf32>
    %71 = vector.shape_cast %70 : vector<1x16x32xf32> to vector<16x32xf32>
    %cst_42 = arith.constant dense<0.000000e+00> : vector<8x16xf32>
    %72 = tpu.matmul %5, %71, %cst_42 {dimension_numbers = #tpu.dot_dimension_numbers<[1], [1], [0], [0], [0, 0, 1, 0], [], []>} : vector<8x32xf32>, vector<16x32xf32>, vector<8x16xf32> -> vector<8x16xf32>
    %73 = arith.index_cast %c1_i32 : i32 to index
    %c0_43 = arith.constant 0 : index
    %c0_44 = arith.constant 0 : index
    %74 = vector.load %arg9[%73, %c0_43, %c0_44] : memref<4x1x16xf32, #tpu.memory_space<vmem>>, vector<1x1x16xf32>
    %75 = vector.shape_cast %74 : vector<1x1x16xf32> to vector<1x16xf32>
    %76 = vector.broadcast %75 : vector<1x16xf32> to vector<8x16xf32>
    %77 = arith.addf %72, %76 : vector<8x16xf32>
    %cst_45 = arith.constant dense<0.000000e+00> : vector<8x8xf32>
    %78 = tpu.matmul %59, %68, %cst_45 {dimension_numbers = #tpu.dot_dimension_numbers<[1], [1], [0], [0], [0, 0, 1, 0], [], []>} : vector<8x16xf32>, vector<8x16xf32>, vector<8x8xf32> -> vector<8x8xf32>
    %cst_46 = arith.constant dense<0xFF800000> : vector<8xf32>
    %79 = vector.multi_reduction <maximumf>, %78, %cst_46 [1] : vector<8x8xf32> to vector<8xf32>
    %80 = vector.shape_cast %79 : vector<8xf32> to vector<8x1xf32>
    %81 = vector.broadcast %80 : vector<8x1xf32> to vector<8x8xf32>
    %82 = arith.subf %78, %81 : vector<8x8xf32>
    %83 = math.exp %82 : vector<8x8xf32>
    %cst_47 = arith.constant dense<0.000000e+00> : vector<8xf32>
    %84 = vector.multi_reduction <add>, %83, %cst_47 [1] : vector<8x8xf32> to vector<8xf32>
    %85 = vector.shape_cast %84 : vector<8xf32> to vector<8x1xf32>
    %86 = tpu.reciprocal %85 {approx = true} : vector<8x1xf32> -> vector<8x1xf32>
    %87 = vector.broadcast %86 : vector<8x1xf32> to vector<8x8xf32>
    %88 = arith.mulf %83, %87 : vector<8x8xf32>
    %cst_48 = arith.constant dense<0.000000e+00> : vector<8x16xf32>
    %89 = tpu.matmul %88, %77, %cst_48 {dimension_numbers = #tpu.dot_dimension_numbers<[1], [0], [0], [1], [0, 0, 1, 1], [], []>} : vector<8x8xf32>, vector<8x16xf32>, vector<8x16xf32> -> vector<8x16xf32>
    %90 = arith.index_cast %c1_i32 : i32 to index
    %c0_49 = arith.constant 0 : index
    %c0_50 = arith.constant 0 : index
    %91 = vector.load %arg10[%90, %c0_49, %c0_50] : memref<4x16x32xf32, #tpu.memory_space<vmem>>, vector<1x16x32xf32>
    %92 = vector.shape_cast %91 : vector<1x16x32xf32> to vector<16x32xf32>
    %cst_51 = arith.constant dense<0.000000e+00> : vector<8x32xf32>
    %93 = tpu.matmul %89, %92, %cst_51 {dimension_numbers = #tpu.dot_dimension_numbers<[1], [0], [0], [1], [0, 0, 1, 1], [], []>} : vector<8x16xf32>, vector<16x32xf32>, vector<8x32xf32> -> vector<8x32xf32>
    %94 = arith.addf %50, %93 : vector<8x32xf32>
    %c2_i32 = arith.constant 2 : i32
    %95 = arith.index_cast %c2_i32 : i32 to index
    %c0_52 = arith.constant 0 : index
    %c0_53 = arith.constant 0 : index
    %96 = vector.load %arg4[%95, %c0_52, %c0_53] : memref<4x16x32xf32, #tpu.memory_space<vmem>>, vector<1x16x32xf32>
    %97 = vector.shape_cast %96 : vector<1x16x32xf32> to vector<16x32xf32>
    %cst_54 = arith.constant dense<0.000000e+00> : vector<8x16xf32>
    %98 = tpu.matmul %1, %97, %cst_54 {dimension_numbers = #tpu.dot_dimension_numbers<[1], [1], [0], [0], [0, 0, 1, 0], [], []>} : vector<8x32xf32>, vector<16x32xf32>, vector<8x16xf32> -> vector<8x16xf32>
    %99 = arith.index_cast %c2_i32 : i32 to index
    %c0_55 = arith.constant 0 : index
    %c0_56 = arith.constant 0 : index
    %100 = vector.load %arg5[%99, %c0_55, %c0_56] : memref<4x1x16xf32, #tpu.memory_space<vmem>>, vector<1x1x16xf32>
    %101 = vector.shape_cast %100 : vector<1x1x16xf32> to vector<1x16xf32>
    %102 = vector.broadcast %101 : vector<1x16xf32> to vector<8x16xf32>
    %103 = arith.addf %98, %102 : vector<8x16xf32>
    %104 = arith.index_cast %c2_i32 : i32 to index
    %c0_57 = arith.constant 0 : index
    %c0_58 = arith.constant 0 : index
    %105 = vector.load %arg6[%104, %c0_57, %c0_58] : memref<4x16x32xf32, #tpu.memory_space<vmem>>, vector<1x16x32xf32>
    %106 = vector.shape_cast %105 : vector<1x16x32xf32> to vector<16x32xf32>
    %cst_59 = arith.constant dense<0.000000e+00> : vector<8x16xf32>
    %107 = tpu.matmul %3, %106, %cst_59 {dimension_numbers = #tpu.dot_dimension_numbers<[1], [1], [0], [0], [0, 0, 1, 0], [], []>} : vector<8x32xf32>, vector<16x32xf32>, vector<8x16xf32> -> vector<8x16xf32>
    %108 = arith.index_cast %c2_i32 : i32 to index
    %c0_60 = arith.constant 0 : index
    %c0_61 = arith.constant 0 : index
    %109 = vector.load %arg7[%108, %c0_60, %c0_61] : memref<4x1x16xf32, #tpu.memory_space<vmem>>, vector<1x1x16xf32>
    %110 = vector.shape_cast %109 : vector<1x1x16xf32> to vector<1x16xf32>
    %111 = vector.broadcast %110 : vector<1x16xf32> to vector<8x16xf32>
    %112 = arith.addf %107, %111 : vector<8x16xf32>
    %113 = arith.index_cast %c2_i32 : i32 to index
    %c0_62 = arith.constant 0 : index
    %c0_63 = arith.constant 0 : index
    %114 = vector.load %arg8[%113, %c0_62, %c0_63] : memref<4x16x32xf32, #tpu.memory_space<vmem>>, vector<1x16x32xf32>
    %115 = vector.shape_cast %114 : vector<1x16x32xf32> to vector<16x32xf32>
    %cst_64 = arith.constant dense<0.000000e+00> : vector<8x16xf32>
    %116 = tpu.matmul %5, %115, %cst_64 {dimension_numbers = #tpu.dot_dimension_numbers<[1], [1], [0], [0], [0, 0, 1, 0], [], []>} : vector<8x32xf32>, vector<16x32xf32>, vector<8x16xf32> -> vector<8x16xf32>
    %117 = arith.index_cast %c2_i32 : i32 to index
    %c0_65 = arith.constant 0 : index
    %c0_66 = arith.constant 0 : index
    %118 = vector.load %arg9[%117, %c0_65, %c0_66] : memref<4x1x16xf32, #tpu.memory_space<vmem>>, vector<1x1x16xf32>
    %119 = vector.shape_cast %118 : vector<1x1x16xf32> to vector<1x16xf32>
    %120 = vector.broadcast %119 : vector<1x16xf32> to vector<8x16xf32>
    %121 = arith.addf %116, %120 : vector<8x16xf32>
    %cst_67 = arith.constant dense<0.000000e+00> : vector<8x8xf32>
    %122 = tpu.matmul %103, %112, %cst_67 {dimension_numbers = #tpu.dot_dimension_numbers<[1], [1], [0], [0], [0, 0, 1, 0], [], []>} : vector<8x16xf32>, vector<8x16xf32>, vector<8x8xf32> -> vector<8x8xf32>
    %cst_68 = arith.constant dense<0xFF800000> : vector<8xf32>
    %123 = vector.multi_reduction <maximumf>, %122, %cst_68 [1] : vector<8x8xf32> to vector<8xf32>
    %124 = vector.shape_cast %123 : vector<8xf32> to vector<8x1xf32>
    %125 = vector.broadcast %124 : vector<8x1xf32> to vector<8x8xf32>
    %126 = arith.subf %122, %125 : vector<8x8xf32>
    %127 = math.exp %126 : vector<8x8xf32>
    %cst_69 = arith.constant dense<0.000000e+00> : vector<8xf32>
    %128 = vector.multi_reduction <add>, %127, %cst_69 [1] : vector<8x8xf32> to vector<8xf32>
    %129 = vector.shape_cast %128 : vector<8xf32> to vector<8x1xf32>
    %130 = tpu.reciprocal %129 {approx = true} : vector<8x1xf32> -> vector<8x1xf32>
    %131 = vector.broadcast %130 : vector<8x1xf32> to vector<8x8xf32>
    %132 = arith.mulf %127, %131 : vector<8x8xf32>
    %cst_70 = arith.constant dense<0.000000e+00> : vector<8x16xf32>
    %133 = tpu.matmul %132, %121, %cst_70 {dimension_numbers = #tpu.dot_dimension_numbers<[1], [0], [0], [1], [0, 0, 1, 1], [], []>} : vector<8x8xf32>, vector<8x16xf32>, vector<8x16xf32> -> vector<8x16xf32>
    %134 = arith.index_cast %c2_i32 : i32 to index
    %c0_71 = arith.constant 0 : index
    %c0_72 = arith.constant 0 : index
    %135 = vector.load %arg10[%134, %c0_71, %c0_72] : memref<4x16x32xf32, #tpu.memory_space<vmem>>, vector<1x16x32xf32>
    %136 = vector.shape_cast %135 : vector<1x16x32xf32> to vector<16x32xf32>
    %cst_73 = arith.constant dense<0.000000e+00> : vector<8x32xf32>
    %137 = tpu.matmul %133, %136, %cst_73 {dimension_numbers = #tpu.dot_dimension_numbers<[1], [0], [0], [1], [0, 0, 1, 1], [], []>} : vector<8x16xf32>, vector<16x32xf32>, vector<8x32xf32> -> vector<8x32xf32>
    %138 = arith.addf %94, %137 : vector<8x32xf32>
    %c3_i32 = arith.constant 3 : i32
    %139 = arith.index_cast %c3_i32 : i32 to index
    %c0_74 = arith.constant 0 : index
    %c0_75 = arith.constant 0 : index
    %140 = vector.load %arg4[%139, %c0_74, %c0_75] : memref<4x16x32xf32, #tpu.memory_space<vmem>>, vector<1x16x32xf32>
    %141 = vector.shape_cast %140 : vector<1x16x32xf32> to vector<16x32xf32>
    %cst_76 = arith.constant dense<0.000000e+00> : vector<8x16xf32>
    %142 = tpu.matmul %1, %141, %cst_76 {dimension_numbers = #tpu.dot_dimension_numbers<[1], [1], [0], [0], [0, 0, 1, 0], [], []>} : vector<8x32xf32>, vector<16x32xf32>, vector<8x16xf32> -> vector<8x16xf32>
    %143 = arith.index_cast %c3_i32 : i32 to index
    %c0_77 = arith.constant 0 : index
    %c0_78 = arith.constant 0 : index
    %144 = vector.load %arg5[%143, %c0_77, %c0_78] : memref<4x1x16xf32, #tpu.memory_space<vmem>>, vector<1x1x16xf32>
    %145 = vector.shape_cast %144 : vector<1x1x16xf32> to vector<1x16xf32>
    %146 = vector.broadcast %145 : vector<1x16xf32> to vector<8x16xf32>
    %147 = arith.addf %142, %146 : vector<8x16xf32>
    %148 = arith.index_cast %c3_i32 : i32 to index
    %c0_79 = arith.constant 0 : index
    %c0_80 = arith.constant 0 : index
    %149 = vector.load %arg6[%148, %c0_79, %c0_80] : memref<4x16x32xf32, #tpu.memory_space<vmem>>, vector<1x16x32xf32>
    %150 = vector.shape_cast %149 : vector<1x16x32xf32> to vector<16x32xf32>
    %cst_81 = arith.constant dense<0.000000e+00> : vector<8x16xf32>
    %151 = tpu.matmul %3, %150, %cst_81 {dimension_numbers = #tpu.dot_dimension_numbers<[1], [1], [0], [0], [0, 0, 1, 0], [], []>} : vector<8x32xf32>, vector<16x32xf32>, vector<8x16xf32> -> vector<8x16xf32>
    %152 = arith.index_cast %c3_i32 : i32 to index
    %c0_82 = arith.constant 0 : index
    %c0_83 = arith.constant 0 : index
    %153 = vector.load %arg7[%152, %c0_82, %c0_83] : memref<4x1x16xf32, #tpu.memory_space<vmem>>, vector<1x1x16xf32>
    %154 = vector.shape_cast %153 : vector<1x1x16xf32> to vector<1x16xf32>
    %155 = vector.broadcast %154 : vector<1x16xf32> to vector<8x16xf32>
    %156 = arith.addf %151, %155 : vector<8x16xf32>
    %157 = arith.index_cast %c3_i32 : i32 to index
    %c0_84 = arith.constant 0 : index
    %c0_85 = arith.constant 0 : index
    %158 = vector.load %arg8[%157, %c0_84, %c0_85] : memref<4x16x32xf32, #tpu.memory_space<vmem>>, vector<1x16x32xf32>
    %159 = vector.shape_cast %158 : vector<1x16x32xf32> to vector<16x32xf32>
    %cst_86 = arith.constant dense<0.000000e+00> : vector<8x16xf32>
    %160 = tpu.matmul %5, %159, %cst_86 {dimension_numbers = #tpu.dot_dimension_numbers<[1], [1], [0], [0], [0, 0, 1, 0], [], []>} : vector<8x32xf32>, vector<16x32xf32>, vector<8x16xf32> -> vector<8x16xf32>
    %161 = arith.index_cast %c3_i32 : i32 to index
    %c0_87 = arith.constant 0 : index
    %c0_88 = arith.constant 0 : index
    %162 = vector.load %arg9[%161, %c0_87, %c0_88] : memref<4x1x16xf32, #tpu.memory_space<vmem>>, vector<1x1x16xf32>
    %163 = vector.shape_cast %162 : vector<1x1x16xf32> to vector<1x16xf32>
    %164 = vector.broadcast %163 : vector<1x16xf32> to vector<8x16xf32>
    %165 = arith.addf %160, %164 : vector<8x16xf32>
    %cst_89 = arith.constant dense<0.000000e+00> : vector<8x8xf32>
    %166 = tpu.matmul %147, %156, %cst_89 {dimension_numbers = #tpu.dot_dimension_numbers<[1], [1], [0], [0], [0, 0, 1, 0], [], []>} : vector<8x16xf32>, vector<8x16xf32>, vector<8x8xf32> -> vector<8x8xf32>
    %cst_90 = arith.constant dense<0xFF800000> : vector<8xf32>
    %167 = vector.multi_reduction <maximumf>, %166, %cst_90 [1] : vector<8x8xf32> to vector<8xf32>
    %168 = vector.shape_cast %167 : vector<8xf32> to vector<8x1xf32>
    %169 = vector.broadcast %168 : vector<8x1xf32> to vector<8x8xf32>
    %170 = arith.subf %166, %169 : vector<8x8xf32>
    %171 = math.exp %170 : vector<8x8xf32>
    %cst_91 = arith.constant dense<0.000000e+00> : vector<8xf32>
    %172 = vector.multi_reduction <add>, %171, %cst_91 [1] : vector<8x8xf32> to vector<8xf32>
    %173 = vector.shape_cast %172 : vector<8xf32> to vector<8x1xf32>
    %174 = tpu.reciprocal %173 {approx = true} : vector<8x1xf32> -> vector<8x1xf32>
    %175 = vector.broadcast %174 : vector<8x1xf32> to vector<8x8xf32>
    %176 = arith.mulf %171, %175 : vector<8x8xf32>
    %cst_92 = arith.constant dense<0.000000e+00> : vector<8x16xf32>
    %177 = tpu.matmul %176, %165, %cst_92 {dimension_numbers = #tpu.dot_dimension_numbers<[1], [0], [0], [1], [0, 0, 1, 1], [], []>} : vector<8x8xf32>, vector<8x16xf32>, vector<8x16xf32> -> vector<8x16xf32>
    %178 = arith.index_cast %c3_i32 : i32 to index
    %c0_93 = arith.constant 0 : index
    %c0_94 = arith.constant 0 : index
    %179 = vector.load %arg10[%178, %c0_93, %c0_94] : memref<4x16x32xf32, #tpu.memory_space<vmem>>, vector<1x16x32xf32>
    %180 = vector.shape_cast %179 : vector<1x16x32xf32> to vector<16x32xf32>
    %cst_95 = arith.constant dense<0.000000e+00> : vector<8x32xf32>
    %181 = tpu.matmul %177, %180, %cst_95 {dimension_numbers = #tpu.dot_dimension_numbers<[1], [0], [0], [1], [0, 0, 1, 1], [], []>} : vector<8x16xf32>, vector<16x32xf32>, vector<8x32xf32> -> vector<8x32xf32>
    %182 = arith.addf %138, %181 : vector<8x32xf32>
    %c4_i32 = arith.constant 4 : i32
    %c0_96 = arith.constant 0 : index
    %c0_97 = arith.constant 0 : index
    %183 = vector.load %arg11[%c0_96, %c0_97] : memref<1x32xf32, #tpu.memory_space<vmem>>, vector<1x32xf32>
    %184 = vector.broadcast %183 : vector<1x32xf32> to vector<8x32xf32>
    %185 = arith.addf %182, %184 : vector<8x32xf32>
    %c0_98 = arith.constant 0 : index
    %c0_99 = arith.constant 0 : index
    %c0_100 = arith.constant 0 : index
    %186 = vector.load %arg12[%c0_98, %c0_99, %c0_100] : memref<1x8x32xf32, #tpu.memory_space<vmem>>, vector<1x8x32xf32>
    %187 = vector.shape_cast %186 : vector<1x8x32xf32> to vector<8x32xf32>
    %188 = vector.shape_cast %185 : vector<8x32xf32> to vector<1x8x32xf32>
    tpu.vector_store %arg12[%c0_98, %c0_99, %c0_100], %188 {strides = array<i32>} : memref<1x8x32xf32, #tpu.memory_space<vmem>>, vector<1x8x32xf32>,
    return
  }
  func.func @transform_0(%arg0: i32) -> (i32, i32, i32) {
    %c0_i32 = arith.constant 0 : i32
    %c0_i32_0 = arith.constant 0 : i32
    %c0_i32_1 = arith.constant 0 : i32
    return %arg0, %c0_i32, %c0_i32_0 : i32, i32, i32
  }
  func.func @transform_1(%arg0: i32) -> (i32, i32, i32) {
    %c0_i32 = arith.constant 0 : i32
    %c0_i32_0 = arith.constant 0 : i32
    %c0_i32_1 = arith.constant 0 : i32
    return %arg0, %c0_i32, %c0_i32_0 : i32, i32, i32
  }
  func.func @transform_2(%arg0: i32) -> (i32, i32, i32) {
    %c0_i32 = arith.constant 0 : i32
    %c0_i32_0 = arith.constant 0 : i32
    %c0_i32_1 = arith.constant 0 : i32
    return %arg0, %c0_i32, %c0_i32_0 : i32, i32, i32
  }
  func.func @transform_3(%arg0: i32) -> (i32, i32, i32) {
    %c0_i32 = arith.constant 0 : i32
    %c0_i32_0 = arith.constant 0 : i32
    %c0_i32_1 = arith.constant 0 : i32
    %c0_i32_2 = arith.constant 0 : i32
    return %c0_i32, %c0_i32_0, %c0_i32_1 : i32, i32, i32
  }
  func.func @transform_4(%arg0: i32) -> (i32, i32, i32) {
    %c0_i32 = arith.constant 0 : i32
    %c0_i32_0 = arith.constant 0 : i32
    %c0_i32_1 = arith.constant 0 : i32
    %c0_i32_2 = arith.constant 0 : i32
    return %c0_i32, %c0_i32_0, %c0_i32_1 : i32, i32, i32
  }
  func.func @transform_5(%arg0: i32) -> (i32, i32, i32) {
    %c0_i32 = arith.constant 0 : i32
    %c0_i32_0 = arith.constant 0 : i32
    %c0_i32_1 = arith.constant 0 : i32
    %c0_i32_2 = arith.constant 0 : i32
    return %c0_i32, %c0_i32_0, %c0_i32_1 : i32, i32, i32
  }
  func.func @transform_6(%arg0: i32) -> (i32, i32, i32) {
    %c0_i32 = arith.constant 0 : i32
    %c0_i32_0 = arith.constant 0 : i32
    %c0_i32_1 = arith.constant 0 : i32
    %c0_i32_2 = arith.constant 0 : i32
    return %c0_i32, %c0_i32_0, %c0_i32_1 : i32, i32, i32
  }
  func.func @transform_7(%arg0: i32) -> (i32, i32, i32) {
    %c0_i32 = arith.constant 0 : i32
    %c0_i32_0 = arith.constant 0 : i32
    %c0_i32_1 = arith.constant 0 : i32
    %c0_i32_2 = arith.constant 0 : i32
    return %c0_i32, %c0_i32_0, %c0_i32_1 : i32, i32, i32
  }
  func.func @transform_8(%arg0: i32) -> (i32, i32, i32) {
    %c0_i32 = arith.constant 0 : i32
    %c0_i32_0 = arith.constant 0 : i32
    %c0_i32_1 = arith.constant 0 : i32
    %c0_i32_2 = arith.constant 0 : i32
    return %c0_i32, %c0_i32_0, %c0_i32_1 : i32, i32, i32
  }
  func.func @transform_9(%arg0: i32) -> (i32, i32, i32) {
    %c0_i32 = arith.constant 0 : i32
    %c0_i32_0 = arith.constant 0 : i32
    %c0_i32_1 = arith.constant 0 : i32
    %c0_i32_2 = arith.constant 0 : i32
    return %c0_i32, %c0_i32_0, %c0_i32_1 : i32, i32, i32
  }
  func.func @transform_10(%arg0: i32) -> (i32, i32) {
    %c0_i32 = arith.constant 0 : i32
    %c0_i32_0 = arith.constant 0 : i32
    %c0_i32_1 = arith.constant 0 : i32
    return %c0_i32, %c0_i32_0 : i32, i32
  }
  func.func @transform_11(%arg0: i32) -> (i32, i32, i32) {
    %c0_i32 = arith.constant 0 : i32
    %c0_i32_0 = arith.constant 0 : i32
    %c0_i32_1 = arith.constant 0 : i32
    return %arg0, %c0_i32, %c0_i32_0 : i32, i32, i32
  }
}

</mosaic_0001>

<bundles_post_ra>
// kernel: tpu_custom_call.1
= control target key start
LH: loop header
LB: loop body
LE: loop exit
PB: predicated region body
PF: predicated region fallthrough
CT: control target
= control target key end

     0   :  { %s2541_s0 = inlined_call_operand.hbm [shape: f32[2,8,32], index: 0, kind: input, shape index: {}]   ;;  %s2542_s1 = inlined_call_operand.hbm [shape: f32[2,8,32], index: 1, kind: input, shape index: {}]   ;;  %s2543_s2 = inlined_call_operand.hbm [shape: f32[2,8,32], index: 2, kind: input, shape index: {}]   ;;  %s2544_s3 = inlined_call_operand.hbm [shape: f32[4,16,32], index: 3, kind: input, shape index: {}]   ;;  %s2545_s4 = inlined_call_operand.hbm [shape: f32[4,1,16], index: 4, kind: input, shape index: {}]   ;;  %s2546_s5 = inlined_call_operand.hbm [shape: f32[4,16,32], index: 5, kind: input, shape index: {}]   ;;  %s2547_s6 = inlined_call_operand.vmem [shape: f32[4,1,16], index: 6, kind: input, shape index: {}]   ;;  %s2548_s7 = inlined_call_operand.hbm [shape: f32[4,16,32], index: 7, kind: input, shape index: {}]   ;;  %s2549_s8 = inlined_call_operand.hbm [shape: f32[4,1,16], index: 8, kind: input, shape index: {}]   ;;  %s2550_s9 = inlined_call_operand.hbm [shape: f32[4,16,32], index: 9, kind: input, shape index: {}]   ;;  %s2551_s10 = inlined_call_operand.vmem [shape: f32[1,32], index: 10, kind: input, shape index: {}]   ;;  %s2552_s11 = inlined_call_operand.hbm [shape: f32[2,8,32], index: 11, kind: output, shape index: {}]  }
   0x1   :  { %2568 = sst [smem:[#allocation30_spill]] %s2542_s1 }
   0x2   :  { %2569 = sst [smem:[#allocation31_spill]] %s2544_s3 }
   0x3   :  { %2570 = sst [smem:[#allocation32_spill]] %s2546_s5 }
   0x4   :  { %2571 = sst [smem:[#allocation33_spill]] %s2549_s8 }
   0x5   :  { %2572 = sst [smem:[#allocation34_spill]] %s2551_s10 }
   0x6   :  { %16 = vsyncpa [#allocation3], 0 }
   0x7   :  { %18 = vsyncpa [#allocation3 + $0x1], 0 }
   0x8   :  { %19 = vsyncpa [#allocation6], 0 }
   0x9   :  { %21 = vsyncpa [#allocation6 + $0x1], 0 }
   0xa   :  { %22 = vsyncpa [#allocation9], 0 }
   0xb   :  { %23 = vsyncpa [#allocation12], 0 }
   0xc   :  { %24 = vsyncpa [#allocation15], 0 }
   0xd   :  { %25 = vsyncpa [#allocation4], 0 }
   0xe   :  { %27 = vsyncpa [#allocation4 + $0x1], 0  ;;  %s2191_s17 = smov 0   ;;  %s2193_s18 = smov 0  }
   0xf   :  { %s2195_s19 = smov 0   ;;  %s2197_s20 = smov 0  }
  0x10 LB: > { %2573 = sst [smem:[#allocation24_spill]] %s2107_s17  ;;  %s2215_s24 = sadd.s32 4294967295, %s2119_s20   ;;  %s2119_s20 = sphi %s2197_s20, %s2606_s20   ;;  %s2115_s19 = sphi %s2195_s19, %s2610_s19   ;;  %s2111_s18 = sphi %s2193_s18, %s2609_s18   ;;  %s2107_s17 = sphi %s2191_s17, %s2608_s17  }
  0x11   : > { %2574 = sst [smem:[#allocation25_spill]] %s2119_s20  ;;  %p1533_p0 = scmp.ge.s32.totalorder %s2119_s20, 1 }
  0x12   : > { %s2575_s3 = sld [smem:[#allocation31_spill]]  ;;  %p2567_p1 = scmp.eq.s32.totalorder %s2215_s24, 0 }
  0x13   : > { %p310_p2 = scmp.lt.s32.totalorder %s2119_s20, 3  ;;  %s2121_s26 = smov [#allocation8]  }
  0x14   : > { %s323_s27 = sshll.u32 %s2121_s26, 4  ;;  %s2577_s5 = sld [smem:[#allocation32_spill]]  ;;  %s324_s27 = int_to_ptr.vmem [resolvable:$true] %s323_s27 }
  0x15   : > { %p2220_p3 = pnand %p1533_p0, %p310_p2  ;;  %s2122_s13 = smov [#allocation11]  }
  0x16   : > { %s351_s14 = sshll.u32 %s2122_s13, 4  ;;  %s2553_s15 = smov 128   ;;  %s352_s14 = int_to_ptr.vmem [resolvable:$true] %s351_s14 }
  0x17   : > { %p1649_p4 = pneg %p2220_p3  ;;  %s2555_s16 = smov 8  }
  0x18   : > { %s321_s23 = sshll.u32 %s2575_s3, 4  ;;  %s2579_s8 = sld [smem:[#allocation33_spill]]  ;;  %s322_s23 = int_to_ptr.hbm [resolvable:$true] %s321_s23 }
  0x19   : > { %p2232_p6 = pnand %p1649_p4, %p2567_p1  ;;  %s2125_s28 = smov [#allocation14]  }
  0x1a   : > { %s349_s30 = sshll.u32 %s2577_s5, 4  ;;  %s382_s29 = sshll.u32 %s2125_s28, 4  ;;  %s350_s30 = int_to_ptr.hbm [resolvable:$true] %s349_s30  ;;  %s383_s29 = int_to_ptr.vmem [resolvable:$true] %s382_s29 }
  0x1b   : > { %1652 = dma.hbm_to_vmem [thread:$0]  (!%p2232_p6), %s322_s23, 1024, %s324_s27, [#allocation9], %s2553_s15, %s2553_s15, %s2555_s16  }
  0x1c   : > { %1658 = dma.hbm_to_vmem [thread:$0]  (!%p2232_p6), %s350_s30, 1024, %s352_s14, [#allocation12], %s2553_s15, %s2553_s15, %s2555_s16  }
  0x1d   : > { %s2557_s23 = smov 16   ;;  %s2558_s27 = smov 1  }
  0x1e   : > { %s380_s26 = sshll.u32 %s2579_s8, 4  ;;  %s1532_s30 = sadd.s32 4294967294, %s2119_s20   ;;  %s381_s26 = int_to_ptr.hbm [resolvable:$true] %s380_s26 }
  0x1f   : > { %1664 = dma.hbm_to_vmem [thread:$0]  (!%p2232_p6), %s381_s26, 64, %s383_s29, [#allocation15], %s2557_s23, %s2557_s23, %s2558_s27  }
  0x20   : > { %s2256_s13 = sadd.s32 1, %s2119_s20   ;;  %s40_s14 = sadd.s32 1, %s2115_s19 }
  0x21   : > { %2580 = sst [smem:[#allocation26_spill]] %s2256_s13  ;;  %s37_s21 = ssub.s32 %s2119_s20, %s2256_s13 }
  0x22   : > { %p47_p7 = scmp.ne.s32.totalorder %s2115_s19, %s2111_s18  ;;  %p38_p8 = scmp.eq.s32.totalorder %s37_s21, 0 }
  0x23   : > { %p48_p9 = scmp.eq.s32.totalorder %s2119_s20, 0  ;;  %p53_p10 = scmp.ne.s32.totalorder %s2111_s18, %s2107_s17 }
  0x24   : > { %p297_p11 = scmp.eq.s32.totalorder %s2215_s24, 1  ;;  %p303_p2 = scmp.eq.s32.totalorder %s1532_s30, 1 }
  0x25   : > { %s2268_s22 = scalar_select %p38_p8, %s2115_s19, %s40_s14  }
  0x26   : > { %p49_p12 = por %p48_p9, %p47_p7  ;;  %p2272_p13 = por %p2567_p1, %p53_p10 }
  0x27   : > { %2581 = sst [smem:[#allocation27_spill]] %s2268_s22  ;;  %p2276_p0 = por %p297_p11, %p47_p7 }
  0x28   : > { %p1688_p4 = scmp.lt.s32.totalorder %s2119_s20, 2  ;;  %s2559_s29 = sand.u32 1, %s2115_s19  }
  0x29   : > { %s2583_s28 = scalar_select %p2276_p0, 1, 0 }
  0x2a   : > { %p2282_p5 = por %p303_p2, %p53_p10  ;;  %s2288_s14 = sshll.u32 %s2559_s29, 3 }
  0x2b   : > { %2584 = sst [smem:[#allocation28_spill]] %s2583_s28  ;;  %s2291_s15 = sshll.u32 %s2119_s20, 3 }
  0x2c   : > { %s2585_s21 = scalar_select %p2282_p5, 1, 0 }
  0x2d   : > { %p2293_p8 = pnand %p1688_p4, %p49_p12  ;;  %s432_s30 = sand.u32 1, %s2119_s20  }
  0x2e   : > { %2586 = sst [smem:[#allocation29_spill]] %s2585_s21  ;;  %s436_s5 = scalar_lea.vmem [#allocation5], %s2288_s14 }
  0x2f   : > { %s2588_s1 = sld [smem:[#allocation30_spill]]  ;;  %s444_s8 = sshll.u32 %s436_s5, 4  ;;  %s445_s8 = int_to_ptr.vmem [resolvable:$true] %s444_s8 }
  0x30   : > { %s335_s21 = sshll.u32 %s2545_s4, 4  ;;  %s2306_s17 = scalar_lea.sflag [#allocation6], %s432_s30  ;;  %s336_s21 = int_to_ptr.hbm [resolvable:$true] %s335_s21 }
  0x31   : > { %p1861_p9 = pneg %p2293_p8 }
  0x35   : > { %s440_s3 = scalar_lea.hbm %s2588_s1, %s2291_s15  ;;  %s1864_s23 = scalar_lea.hbm %s2588_s1, 16 }
  0x36   : > { %s442_s22 = sshll.u32 %s440_s3, 4  ;;  %s443_s22 = int_to_ptr.hbm [resolvable:$true] %s442_s22 }
  0x37   : > { %s1857_s28 = sshra.s32 %s443_s22, 4  ;;  %s1858_s28 = int_to_ptr.hbm [resolvable:$true] %s1857_s28 }
  0x38   : > { %s1859_s10 = scalar_lea.hbm %s1858_s28, 8  ;;  %p1865_p12 = scmp.lt.s32.totalorder %s1858_s28, %s2588_s1 }
  0x39   : > { %p1860_p7 = scmp.ne.s32.totalorder %s1858_s28, %s1859_s10  ;;  %p1866_p2 = scmp.lt.s32.totalorder %s1864_s23, %s1859_s10 }
  0x3b   : > { %p1862_p10 = pnand %p1861_p9, %p1860_p7  ;;  %p1867_p4 = por %p1866_p2, %p1865_p12 }
  0x3d   : > { %p1863_p11 = pneg %p1862_p10 }
  0x3f   : > { %p1868_p1 = pnand %p1867_p4, %p1863_p11 }
  0x41   : > { %1871 = shalt.err (!%p1868_p1)
}
  0x42   : > { %1674 = dma.hbm_to_vmem [thread:$0]  (!%p2293_p8), %s443_s22, 128, %s445_s8, %s2306_s17  }
  0x43   : > { %s2128_s13 = smov [#allocation10]   ;;  %s366_s20 = sshll.u32 %s2548_s7, 4  ;;  %s367_s20 = int_to_ptr.hbm [resolvable:$true] %s366_s20 }
  0x44   : > { %s337_s29 = sshll.u32 %s2128_s13, 4  ;;  %s2589_s10 = smov 1   ;;  %s338_s29 = int_to_ptr.vmem [resolvable:$true] %s337_s29 }
  0x45   : > { %s2590_s28 = smov 16   ;;  %s394_s8 = sshll.u32 %s2550_s9, 4  ;;  %s395_s8 = int_to_ptr.hbm [resolvable:$true] %s394_s8 }
  0x46   : > { %1655 = dma.hbm_to_vmem [thread:$0]  (!%p2232_p6), %s336_s21, 64, %s338_s29, [#allocation9], %s2590_s28, %s2590_s28, %s2589_s10  }
  0x47   : > { %s2129_s22 = smov [#allocation13]   ;;  %s2591_s13 = smov 8  }
  0x48   : > { %s368_s27 = sshll.u32 %s2129_s22, 4  ;;  %s2592_s30 = smov 128   ;;  %s369_s27 = int_to_ptr.vmem [resolvable:$true] %s368_s27 }
  0x49   : > { %1661 = dma.hbm_to_vmem [thread:$0]  (!%p2232_p6), %s367_s20, 1024, %s369_s27, [#allocation12], %s2592_s30, %s2592_s30, %s2591_s13  }
  0x4a   : > { %s2130_s5 = smov [#allocation16]   ;;  %s421_s10 = scalar_lea.hbm %s2541_s0, %s2291_s15 }
  0x4b   : > { %s396_s1 = sshll.u32 %s2130_s5, 4  ;;  %s417_s28 = scalar_lea.vmem [#allocation2], %s2288_s14  ;;  %s397_s1 = int_to_ptr.vmem [resolvable:$true] %s396_s1 }
  0x4c   : > { %1667 = dma.hbm_to_vmem [thread:$0]  (!%p2232_p6), %s395_s8, 1024, %s397_s1, [#allocation15], %s2592_s30, %s2592_s30, %s2591_s13  }
  0x4d   : > { %s425_s3 = sshll.u32 %s417_s28, 4  ;;  %s423_s23 = sshll.u32 %s421_s10, 4  ;;  %s426_s3 = int_to_ptr.vmem [resolvable:$true] %s425_s3  ;;  %s424_s23 = int_to_ptr.hbm [resolvable:$true] %s423_s23 }
  0x4e   : > { %s2593_s22 = sand.u32 1, %s2115_s19   ;;  %s1977_s27 = sshra.s32 %s424_s23, 4  ;;  %s1978_s27 = int_to_ptr.hbm [resolvable:$true] %s1977_s27 }
  0x4f   : > { %s414_s20 = scalar_lea.sflag [#allocation3], %s2593_s22  ;;  %s1979_s5 = scalar_lea.hbm %s1978_s27, 8 }
  0x50   : > { %p1980_p1 = scmp.ne.s32.totalorder %s1978_s27, %s1979_s5  ;;  %s1984_s8 = scalar_lea.hbm %s2541_s0, 16 }
  0x51   : > { %p1985_p6 = scmp.lt.s32.totalorder %s1978_s27, %s2541_s0  ;;  %p1986_p11 = scmp.lt.s32.totalorder %s1984_s8, %s1979_s5 }
  0x52   : > { %p1982_p7 = pnand %p1980_p1, %p1861_p9 }
  0x53   : > { %p1987_p12 = por %p1986_p11, %p1985_p6 }
  0x54   : > { %p1983_p10 = pneg %p1982_p7 }
  0x56   : > { %p1988_p2 = pnand %p1987_p12, %p1983_p10 }
  0x58   : > { %1991 = shalt.err (!%p1988_p2)
}
  0x59   : > { %1671 = dma.hbm_to_vmem [thread:$0]  (!%p2293_p8), %s424_s23, 128, %s426_s3, %s414_s20  }
  0x5a   : > { %s459_s10 = scalar_lea.hbm %s2543_s2, %s2291_s15  ;;  %s455_s28 = scalar_lea.vmem [#allocation7], %s2288_s14 }
  0x5b   : > { %s463_s22 = sshll.u32 %s455_s28, 4  ;;  %s461_s1 = sshll.u32 %s459_s10, 4  ;;  %s464_s22 = int_to_ptr.vmem [resolvable:$true] %s463_s22  ;;  %s462_s1 = int_to_ptr.hbm [resolvable:$true] %s461_s1 }
  0x5c   : > { %s2007_s27 = sshra.s32 %s462_s1, 4  ;;  %s2014_s3 = scalar_lea.hbm %s2543_s2, 16  ;;  %s2008_s27 = int_to_ptr.hbm [resolvable:$true] %s2007_s27 }
  0x5d   : > { %s2009_s5 = scalar_lea.hbm %s2008_s27, 8  ;;  %p2015_p10 = scmp.lt.s32.totalorder %s2008_s27, %s2543_s2 }
  0x5e   : > { %p2010_p4 = scmp.ne.s32.totalorder %s2008_s27, %s2009_s5  ;;  %p2016_p6 = scmp.lt.s32.totalorder %s2014_s3, %s2009_s5 }
  0x60   : > { %p2012_p1 = pnand %p2010_p4, %p1861_p9  ;;  %p2017_p11 = por %p2016_p6, %p2015_p10 }
  0x62   : > { %p2013_p7 = pneg %p2012_p1 }
  0x64   : > { %p2018_p12 = pnand %p2017_p11, %p2013_p7 }
  0x66   : > { %2021 = shalt.err (!%p2018_p12)
}
  0x67   : > { %1677 = dma.hbm_to_vmem [thread:$0]  (!%p2293_p8), %s462_s1, 128, %s464_s22, %s2306_s17  }
  0x68   : > { %472 = sbr.rel (%p2220_p3) target bundleno = 2352 (0x930), region = 64  ;;  %s2381_s15 = sand.u32 (!%p2220_p3), 1, %s2111_s18  }
  0x69   : > { %s2384_s14 = sshll.u32 (!%p2220_p3), %s2381_s15, 3  ;;  %s475_s13 = scalar_lea.sflag (!%p2220_p3), [#allocation3], %s2381_s15 }
  0x6a   : > { %s478_s30 = scalar_lea.vmem (!%p2220_p3), [#allocation2], %s2384_s14 }
  0x6d   : > { %2082 = dma.done.wait (%p2272_p13), %s475_s13, 128  }
  0x6e   : > { %2084 = vsyncadd (%p2272_p13), %s475_s13, 4294967168  ;;  %s484_s17 = sand.u32 1, %s2215_s24   ;;  %s488_s16 = scalar_lea.vmem [#allocation5], %s2384_s14 }
  0x6f   : > { %s485_s25 = scalar_lea.sflag [#allocation6], %s484_s17 }
  0x70   : > { %2086 = dma.done.wait (%p2272_p13), %s485_s25, 256  }
  0x71   : > { %2088 = vsyncadd (%p2272_p13), %s485_s25, 4294967040  ;;  %s498_s21 = scalar_lea.vmem [#allocation7], %s2384_s14  ;;  %p2594_p3 = scmp.eq.s32.totalorder %s2215_s24, 0 }
  0x73   : > { %2090 = dma.done.wait (%p2594_p3), [#allocation9], 1088   ;;  %p2595_p8 = pmov %p2594_p3 }
  0x74   : > { %p2596_p9 = pmov %p2594_p3 }
  0x75   : > { %2092 = vsyncadd (%p2595_p8), [#allocation9], 4294966208 }
  0x76   : > { %2094 = dma.done.wait (%p2596_p9), [#allocation12], 2048   ;;  %p2597_p2 = pmov %p2594_p3 }
  0x78   : > { %2096 = vsyncadd (%p2597_p2), [#allocation12], 4294965248  ;;  %p2598_p4 = pmov %p2597_p2 }
  0x79   : > { %p2599_p1 = pmov %p2597_p2 }
  0x7a   : > { %2098 = dma.done.wait (%p2598_p4), [#allocation15], 1088  }
  0x7b   : > { %2100 = vsyncadd (%p2599_p1), [#allocation15], 4294966208  ;;  %vm587_vm0 = vcmask 261120   ;;  %v618_v0 = vld [vmem:[#allocation11 + $0x8] sm:$0xff]  ;;  %v617_v2 = vld [vmem:[#allocation11] sm:$0xff]  ;;  %vm687_vm1 = vcmask 130048  }
  0x7c   : > { %v582_v1 = vld [vmem:[#allocation8 + $0x8] sm:$0xff]  ;;  %1561 = vmatpush.xpose.msk.msra.mxu1 %vm587_vm0, %v618_v0  ;;  %v581_v3 = vld [vmem:[#allocation8] sm:$0xff]  ;;  %v2415_v5 = vld [vmem:[%s478_s30] sm:$0xff]  ;;  %vm714_vm2 = vcmask 64512   ;;  %s1614_s12 = sshll.u32 %s2215_s24, 3  ;;  %s2600_s30 = sld [smem:[#allocation34_spill]] }
  0x7d   : > { %1558 = vmatpush.xpose.msk.msra.mxu0 %vm587_vm0, %v582_v1  ;;  %v2413_v4 = vld [vmem:[%s488_s16] sm:$0xff]  ;;  %v1738_v6 = vld [vmem:[%s2547_s6] ss:$0 sm:$0xff]  ;;  %v753_v18 = vld [vmem:[#allocation8 + $0x18] sm:$0xff]  ;;  %s1357_s23 = scalar_lea.hbm %s2552_s11, %s1614_s12  ;;  %s577_s25 = scalar_lea.vmem [#allocation17], %s2384_s14 }
  0x7e   : > { %v1739_v7 = vld [vmem:[#allocation10] ss:$0 sm:$0xff]  ;;  %v653_v12 = vld [vmem:[#allocation13 + $0x8] sm:$0xff]  ;;  %v652_v13 = vld [vmem:[#allocation13] sm:$0xff]  ;;  %s1359_s16 = sshll.u32 %s577_s25, 4  ;;  %s1347_s24 = scalar_lea.sflag [#allocation4], %s2381_s15  ;;  %s1360_s16 = int_to_ptr.vmem [resolvable:$true] %s1359_s16 }
  0x7f   : > { %1564 = vmatpush.xpose.msk.msra.mxu2 %vm587_vm0, %v653_v12  ;;  %v2433_v16 = vld [vmem:[%s498_s21] sm:$0xff]  ;;  %v1740_v26 = vld [vmem:[#allocation14] ss:$0 sm:$0xff]  ;;  %v1742_v38 = vld [vmem:[#allocation10 + $0x1] ss:$0 sm:$0xff]  ;;  %s1361_s21 = sshll.u32 %s1357_s23, 4  ;;  %s1362_s21 = int_to_ptr.hbm [resolvable:$true] %s1361_s21 }
  0x80   : > { %1562 = vmatpush.xpose.msk.msra.mxu1 %vm587_vm0, %v617_v2  ;;  %v787_v17 = vld [vmem:[#allocation11 + $0x18] sm:$0xff]  ;;  %v786_v19 = vld [vmem:[#allocation11 + $0x10] sm:$0xff]  ;;  %v1741_v29 = vld [vmem:[%s2547_s6 + $0x1] ss:$0 sm:$0xff]  ;;  %s2051_s26 = sshra.s32 %s1362_s21, 4  ;;  %s2057_s14 = scalar_lea.hbm %s2552_s11, 16  ;;  %s2052_s26 = int_to_ptr.hbm [resolvable:$true] %s2051_s26 }
  0x81   : > { %1559 = vmatpush.xpose.msk.msra.mxu0 %vm587_vm0, %v581_v3  ;;  %v752_v20 = vld [vmem:[#allocation8 + $0x10] sm:$0xff]  ;;  %v821_v32 = vld [vmem:[#allocation13 + $0x18] sm:$0xff]  ;;  %v749_v41 = vld [vmem:[#allocation16] sm:$0xff]  ;;  %s2053_s29 = scalar_lea.hbm %s2052_s26, 8  ;;  %p2058_p6 = scmp.lt.s32.totalorder %s2052_s26, %s2552_s11 }
  0x82   : > { %v820_v33 = vld [vmem:[#allocation13 + $0x10] sm:$0xff]  ;;  %v1743_v42 = vld [vmem:[#allocation14 + $0x1] ss:$0 sm:$0xff]  ;;  %v964_v53 = vld [vmem:[#allocation8 + $0x28] sm:$0xff]  ;;  %p2054_p13 = scmp.ne.s32.totalorder %s2052_s26, %s2053_s29  ;;  %p2059_p11 = scmp.lt.s32.totalorder %s2057_s14, %s2053_s29 }
  0x83   : > { %1563 = vmatmul.msk.f32.vlgmr.msra.gmra.mxu1 %vm587_vm0, %v2413_v4  ;;  %1565 = vmatpush.xpose.msk.msra.mxu2 %vm587_vm0, %v652_v13  ;;  %v750_v34 = vld [vmem:[#allocation16 + $0x8] sm:$0xff]  ;;  %v963_v55 = vld [vmem:[#allocation8 + $0x20] sm:$0xff]  ;;  %v914_v61 = vld [vmem:[#allocation16 + $0x10] sm:$0xff] }
  0x84   : > { %1560 = vmatmul.msk.f32.vlgmr.msra.gmra.mxu0 %vm587_vm0, %v2415_v5  ;;  %1574 = vmatpush.xpose.msk.msrb.mxu1 %vm587_vm0, %v787_v17  ;;  %v998_v54 = vld [vmem:[#allocation11 + $0x28] sm:$0xff]  ;;  %v997_v56 = vld [vmem:[#allocation11 + $0x20] sm:$0xff]  ;;  %v1745_v0 = vld [vmem:[#allocation10 + $0x2] ss:$0 sm:$0xff]  ;;  %p2055_p7 = pnand %p2054_p13, %p2276_p0  ;;  %p2060_p12 = por %p2059_p11, %p2058_p6 }
  0x85   : > { %1570 = vmatpush.xpose.msk.msrb.mxu0 %vm587_vm0, %v753_v18  ;;  %v915_v57 = vld [vmem:[#allocation16 + $0x18] sm:$0xff]  ;;  %v1744_v63 = vld [vmem:[%s2547_s6 + $0x2] ss:$0 sm:$0xff] }
  0x86   : > { %1566 = vmatmul.msk.f32.vlgmr.msra.gmra.mxu2 %vm587_vm0, %v2433_v16  ;;  %p2056_p10 = pneg %p2055_p7 }
  0x87   : > { %1577 = vmatpush.xpose.msk.msrb.mxu2 %vm587_vm0, %v821_v32 }
  0x88   : > { %1575 = vmatpush.xpose.msk.msrb.mxu1 %vm587_vm0, %v786_v19  ;;  %v1746_v19 = vld [vmem:[#allocation14 + $0x2] ss:$0 sm:$0xff]  ;;  %p2061_p3 = pnand %p2060_p12, %p2056_p10 }
  0x89   : > { %1571 = vmatpush.xpose.msk.msrb.mxu0 %vm587_vm0, %v752_v20  ;;  %v1187_v20 = vld [vmem:[#allocation11 + $0x38] sm:$0xff] }
  0x8b   : > { %1576 = vmatmul.msk.f32.vlgmr.msrb.gmra.mxu1 %vm587_vm0, %v2413_v4  ;;  %1578 = vmatpush.xpose.msk.msrb.mxu2 %vm587_vm0, %v820_v33 }
  0x8c   : > { %1572 = vmatmul.msk.f32.vlgmr.msrb.gmra.mxu0 %vm587_vm0, %v2415_v5  ;;  %933 = vmatpush.msra.mxu1 %v915_v57 }
  0x8e   : > { %1579 = vmatmul.msk.f32.vlgmr.msrb.gmra.mxu2 %vm587_vm0, %v2433_v16  ;;  %934 = vmatpush.msra.mxu1 %v914_v61 }
  0x8f   : > { %956 = vmatpush.msra.mxu2 %v750_v34 }
  0x91   : > { %957 = vmatpush.msra.mxu2 %v749_v41 }
 0x100   : > { %v649_v8 = vpop.f32.mrf.mxu1 }
 0x101   : > { %v614_v9 = vpop.f32.mrf.mxu0  ;;  %v650_v10 = vadd.f32 %v1738_v6, %v649_v8 }
 0x102   : > { %v615_v11 = vadd.f32 %v1739_v7, %v614_v9  ;;  %v1032_v7 = vld [vmem:[#allocation13 + $0x28] sm:$0xff] }
 0x103   : > { %1567 = vmatpush.xpose.msk.msra.mxu3 %vm687_vm1, %v650_v10  ;;  %1592 = vmatpush.xpose.msk.msrb.mxu1 %vm587_vm0, %v1032_v7 }
 0x106   : > { %1568 = vmatmul.msk.f32.vlgmr.msra.gmra.mxu3 %vm687_vm1, %v615_v11  ;;  %v1031_v11 = vld [vmem:[#allocation13 + $0x20] sm:$0xff] }
 0x107   : > { %1593 = vmatpush.xpose.msk.msrb.mxu1 %vm587_vm0, %v1031_v11 }
 0x108   : > { %v816_v30 = vpop.f32.mrf.mxu1 }
 0x109   : > { %v684_v27 = vpop.f32.mrf.mxu2  ;;  %v817_v31 = vadd.f32 %v1741_v29, %v816_v30  ;;  %v782_v39 = vpop.f32.mrf.mxu0  ;;  %v1125_v30 = vld [vmem:[#allocation16 + $0x20] sm:$0xff] }
 0x10a   : > { %v685_v28 = vadd.f32 %v1740_v26, %v684_v27  ;;  %v783_v40 = vadd.f32 %v1742_v38, %v782_v39  ;;  %v1152_v26 = vld [vmem:[#allocation8 + $0x30] sm:$0xff] }
 0x10c   : > { %744 = vmatpush.msrb.mxu3 %v685_v28 }
 0x10e   : > { %1580 = vmatpush.xpose.msk.msra.mxu3 %vm687_vm1, %v817_v31  ;;  %v1747_v31 = vld [vmem:[%s2547_s6 + $0x3] ss:$0 sm:$0xff] }
 0x111   : > { %v850_v43 = vpop.f32.mrf.mxu2 }
 0x112   : > { %v851_v44 = vadd.f32 %v1743_v42, %v850_v43 }
 0x114   : > { %908 = vmatpush.msra.mxu0 %v851_v44 }
 0x116   : > { %1589 = vmatpush.xpose.msk.msrb.mxu0 %vm587_vm0, %v998_v54  ;;  %v1314_v54 = vld [vmem:[#allocation16 + $0x30] sm:$0xff] }
 0x11a   : > { %1590 = vmatpush.xpose.msk.msrb.mxu0 %vm587_vm0, %v997_v56  ;;  %v1750_v56 = vld [vmem:[%s2600_s30] ss:$0 sm:$0xff] }
 0x189   : > { %v711_v14 = vpop.f32.mrf.mxu3 }
 0x18a   : > { %v715_v15 = vsel %vm714_vm2, %v711_v14, -inf }
 0x18b   : > { %716 = vmax.xlane.f32.xlu0 %v715_v15 }
 0x1fe   : > { %v717_v21 = vpop.xlane.xlu0 %716 }
 0x1ff   : > { %v718_v22 = vsub.f32 %v711_v14, %v717_v21 }
 0x201   : > { %v719_v23 = vmul.f32 1.442695, %v718_v22 }
 0x203   : > { %1751 = vpow2.f32 %v719_v23  ;;  %v1186_v23 = vld [vmem:[#allocation11 + $0x30] sm:$0xff] }
 0x209   : > { %v1752_v24 = vpop.eup %1751 }
 0x20a   : > { %v721_v25 = vsel %vm714_vm2, %v1752_v24, 0.0 }
 0x20b   : > { %722 = vadd.xlane.f32.xlu0 %v721_v25  ;;  %v1126_v25 = vld [vmem:[#allocation16 + $0x28] sm:$0xff] }
 0x27e   : > { %v723_v35 = vpop.xlane.xlu0 %722 }
 0x27f   : > { %1753 = vrcp.f32 %v723_v35 }
 0x285   : > { %v1754_v36 = vpop.eup %1753 }
 0x286   : > { %v725_v37 = vmul.f32 %v1754_v36, %v1752_v24  ;;  %v1153_v24 = vld [vmem:[#allocation8 + $0x38] sm:$0xff] }
 0x287   : > { %v1221_v36 = vld [vmem:[#allocation13 + $0x38] sm:$0xff] }
 0x288   : > { %1569 = vmatmul.msk.f32.vlgmr.msrb.gmra.mxu3 %vm714_vm2, %v725_v37  ;;  %v1220_v37 = vld [vmem:[#allocation13 + $0x30] sm:$0xff] }
 0x289   : > { %1585 = vmatpush.xpose.msk.msrb.mxu3 %vm587_vm0, %v964_v53 }
 0x28d   : > { %1586 = vmatpush.xpose.msk.msrb.mxu3 %vm587_vm0, %v963_v55 }
 0x290   : > { %1581 = vmatmul.msk.f32.vlgmr.msra.gmra.mxu3 %vm687_vm1, %v783_v40 }
 0x298   : > { %1587 = vmatmul.msk.f32.vlgmr.msrb.gmra.mxu3 %vm587_vm0, %v2415_v5 }
 0x30b   : > { %v746_v45 = vpop.f32.mrf.mxu3 }
 0x30c   : > { %1584 = vmatmul.msk.f32.vlgmr.msra.gmra.mxu2 %vm687_vm1, %v746_v45 }
 0x313   : > { %v876_v46 = vpop.f32.mrf.mxu3 }
 0x314   : > { %v879_v47 = vsel %vm714_vm2, %v876_v46, -inf }
 0x315   : > { %880 = vmax.xlane.f32.xlu1 %v879_v47 }
 0x31b   : > { %v993_v1 = vpop.f32.mrf.mxu3 }
 0x31c   : > { %v994_v6 = vadd.f32 %v1745_v0, %v993_v1 }
 0x388   : > { %v881_v48 = vpop.xlane.xlu1 %880 }
 0x389   : > { %v882_v49 = vsub.f32 %v876_v46, %v881_v48  ;;  %v1749_v48 = vld [vmem:[#allocation14 + $0x3] ss:$0 sm:$0xff] }
 0x38b   : > { %v883_v50 = vmul.f32 1.442695, %v882_v49 }
 0x38d   : > { %1755 = vpow2.f32 %v883_v50 }
 0x38f   : > { %v959_v8 = vpop.f32.mrf.mxu2 }
 0x393   : > { %v1756_v51 = vpop.eup %1755 }
 0x394   : > { %v885_v52 = vsel %vm714_vm2, %v1756_v51, 0.0 }
 0x395   : > { %886 = vadd.xlane.f32.xlu1 %v885_v52 }
 0x408   : > { %v887_v58 = vpop.xlane.xlu1 %886 }
 0x409   : > { %1757 = vrcp.f32 %v887_v58 }
 0x40f   : > { %v1758_v59 = vpop.eup %1757 }
 0x410   : > { %v889_v60 = vmul.f32 %v1758_v59, %v1756_v51 }
 0x412   : > { %1582 = vmatmul.msk.f32.vlgmr.msra.gmra.mxu0 %vm714_vm2, %v889_v60 }
 0x413   : > { %1144 = vmatpush.msra.mxu0 %v1126_v25 }
 0x415   : > { %1145 = vmatpush.msra.mxu0 %v1125_v30 }
 0x41a   : > { %1591 = vmatmul.msk.f32.vlgmr.msrb.gmra.mxu0 %vm587_vm0, %v2413_v4 }
 0x48f   : > { %v910_v62 = vpop.f32.mrf.mxu0 }
 0x490   : > { %1583 = vmatmul.msk.f32.vlgmr.msra.gmra.mxu1 %vm687_vm1, %v910_v62 }
 0x491   : > { %1599 = vmatpush.xpose.msk.msra.mxu1 %vm587_vm0, %v1153_v24 }
 0x495   : > { %1600 = vmatpush.xpose.msk.msra.mxu1 %vm587_vm0, %v1152_v26 }
 0x497   : > { %v1027_v2 = vpop.f32.mrf.mxu0 }
 0x498   : > { %v1028_v3 = vadd.f32 %v1744_v63, %v1027_v2  ;;  %1594 = vmatmul.msk.f32.vlgmr.msrb.gmra.mxu1 %vm587_vm0, %v2433_v16 }
 0x49a   : > { %1595 = vmatpush.xpose.msk.msrb.mxu2 %vm687_vm1, %v1028_v3 }
 0x49d   : > { %1596 = vmatmul.msk.f32.vlgmr.msrb.gmra.mxu2 %vm687_vm1, %v994_v6 }
 0x49e   : > { %1603 = vmatpush.xpose.msk.msra.mxu2 %vm587_vm0, %v1187_v20 }
 0x4a0   : > { %1601 = vmatmul.msk.f32.vlgmr.msra.gmra.mxu1 %vm587_vm0, %v2415_v5  ;;  %v1748_v5 = vld [vmem:[#allocation10 + $0x3] ss:$0 sm:$0xff] }
 0x4a2   : > { %1604 = vmatpush.xpose.msk.msra.mxu2 %vm587_vm0, %v1186_v23 }
 0x4a5   : > { %1605 = vmatmul.msk.f32.vlgmr.msra.gmra.mxu2 %vm587_vm0, %v2413_v4 }
 0x50d   : > { %v936_v18 = vpop.f32.mrf.mxu1 }
 0x50e   : > { %v960_v38 = vadd.f32 %v959_v8, %v936_v18 }
 0x515   : > { %v1061_v21 = vpop.f32.mrf.mxu1 }
 0x516   : > { %v1062_v22 = vadd.f32 %v1746_v19, %v1061_v21 }
 0x518   : > { %1119 = vmatpush.msra.mxu3 %v1062_v22 }
 0x51a   : > { %1606 = vmatpush.xpose.msk.msrb.mxu3 %vm587_vm0, %v1221_v36 }
 0x51d   : > { %v1182_v34 = vpop.f32.mrf.mxu1 }
 0x51e   : > { %v1183_v35 = vadd.f32 %v1748_v5, %v1182_v34  ;;  %1607 = vmatpush.xpose.msk.msrb.mxu3 %vm587_vm0, %v1220_v37 }
 0x520   : > { %v1087_v9 = vpop.f32.mrf.mxu2 }
 0x521   : > { %v1090_v10 = vsel %vm714_vm2, %v1087_v9, -inf }
 0x522   : > { %1091 = vmax.xlane.f32.xlu2 %v1090_v10 }
 0x528   : > { %v1216_v32 = vpop.f32.mrf.mxu2 }
 0x529   : > { %v1217_v33 = vadd.f32 %v1747_v31, %v1216_v32 }
 0x52b   : > { %1609 = vmatpush.xpose.msk.msrb.mxu0 %vm687_vm1, %v1217_v33 }
 0x595   : > { %v1092_v12 = vpop.xlane.xlu2 %1091 }
 0x596   : > { %v1093_v13 = vsub.f32 %v1087_v9, %v1092_v12 }
 0x598   : > { %v1094_v14 = vmul.f32 1.442695, %v1093_v13 }
 0x59a   : > { %1759 = vpow2.f32 %v1094_v14 }
 0x5a0   : > { %v1760_v15 = vpop.eup %1759 }
 0x5a1   : > { %v1096_v17 = vsel %vm714_vm2, %v1760_v15, 0.0 }
 0x5a2   : > { %1097 = vadd.xlane.f32.xlu2 %v1096_v17 }
 0x615   : > { %v1098_v27 = vpop.xlane.xlu2 %1097 }
 0x616   : > { %1761 = vrcp.f32 %v1098_v27 }
 0x61c   : > { %v1762_v28 = vpop.eup %1761 }
 0x61d   : > { %v1100_v29 = vmul.f32 %v1762_v28, %v1760_v15 }
 0x61f   : > { %1597 = vmatmul.msk.f32.vlgmr.msra.gmra.mxu3 %vm714_vm2, %v1100_v29 }
 0x627   : > { %1608 = vmatmul.msk.f32.vlgmr.msrb.gmra.mxu3 %vm587_vm0, %v2433_v16  ;;  %v1315_v16 = vld [vmem:[#allocation16 + $0x38] sm:$0xff] }
 0x628   : > { %1333 = vmatpush.msrb.mxu2 %v1315_v16 }
 0x62a   : > { %1334 = vmatpush.msrb.mxu2 %v1314_v54 }
 0x6a2   : > { %v1121_v4 = vpop.f32.mrf.mxu3 }
 0x6a3   : > { %1598 = vmatmul.msk.f32.vlgmr.msra.gmra.mxu0 %vm687_vm1, %v1121_v4 }
 0x6aa   : > { %v1250_v49 = vpop.f32.mrf.mxu3 }
 0x6ab   : > { %1610 = vmatmul.msk.f32.vlgmr.msrb.gmra.mxu0 %vm687_vm1, %v1183_v35  ;;  %v1251_v50 = vadd.f32 %v1749_v48, %v1250_v49 }
 0x6ad   : > { %1308 = vmatpush.msrb.mxu1 %v1251_v50 }
 0x720   : > { %v1147_v39 = vpop.f32.mrf.mxu0 }
 0x721   : > { %v1150_v40 = vadd.f32 %v1147_v39, %v960_v38 }
 0x728   : > { %v1276_v41 = vpop.f32.mrf.mxu0 }
 0x729   : > { %v1279_v42 = vsel %vm714_vm2, %v1276_v41, -inf }
 0x72a   : > { %1280 = vmax.xlane.f32.xlu0 %v1279_v42 }
 0x79d   : > { %v1281_v43 = vpop.xlane.xlu0 %1280 }
 0x79e   : > { %v1282_v44 = vsub.f32 %v1276_v41, %v1281_v43 }
 0x7a0   : > { %v1283_v45 = vmul.f32 1.442695, %v1282_v44 }
 0x7a2   : > { %1763 = vpow2.f32 %v1283_v45 }
 0x7a8   : > { %v1764_v46 = vpop.eup %1763 }
 0x7a9   : > { %v1285_v47 = vsel %vm714_vm2, %v1764_v46, 0.0 }
 0x7aa   : > { %1286 = vadd.xlane.f32.xlu1 %v1285_v47 }
 0x81d   : > { %v1287_v51 = vpop.xlane.xlu1 %1286 }
 0x81e   : > { %1765 = vrcp.f32 %v1287_v51 }
 0x824   : > { %v1766_v52 = vpop.eup %1765 }
 0x825   : > { %v1289_v53 = vmul.f32 %v1766_v52, %v1764_v46 }
 0x827   : > { %1611 = vmatmul.msk.f32.vlgmr.msrb.gmra.mxu1 %vm714_vm2, %v1289_v53 }
 0x8a4   : > { %v1310_v55 = vpop.f32.mrf.mxu1 }
 0x8a5   : > { %1612 = vmatmul.msk.f32.vlgmr.msrb.gmra.mxu2 %vm687_vm1, %v1310_v55 }
 0x928   : > { %v1336_v57 = vpop.f32.mrf.mxu2 }
 0x929   : > { %v1339_v58 = vadd.f32 %v1336_v57, %v1150_v40 }
 0x92b   : > { %v1344_v59 = vadd.f32 %v1750_v56, %v1339_v58 }
 0x92d   : > { %1345 = vst.msk [vmem:[%s577_s25] sm:$0xff] %vm587_vm0, %v1344_v59 }
 0x92e   : > { %2064 = shalt.err (!%p2061_p3)
}
 0x92f   : > { %1647 = dma.vmem_to_hbm [thread:$0]  (%p2276_p0), %s1360_s16, 128, %s1362_s21, %s1347_s24  }
 0x930 PF: > { %s2602_s15 = sld [smem:[#allocation24_spill]] }
 0x931   : > { %s2604_s5 = sld [smem:[#allocation25_spill]] }
 0x936   : > { %s1373_s12 = sand.u32 1, %s2602_s15  }
 0x937   : > { %p2605_p8 = scmp.ge.s32.totalorder %s2604_s5, 2  ;;  %s1374_s8 = scalar_lea.sflag [#allocation4], %s1373_s12 }
 0x939   : > { %p1679_p9 = pnand %p2605_p8, %p2282_p5 }
 0x93b   : > { %p1680_p2 = pneg %p1679_p9 }
 0x93d   : > { %2102 = dma.done.wait (%p1680_p2), %s1374_s8, 128  }
 0x93e   : > { %2104 = vsyncadd (%p1680_p2), %s1374_s8, 4294967168  ;;  %s2606_s20 = sld [smem:[#allocation26_spill]]  ;;  %s2608_s17 = smov %s2111_s18 }
 0x93f   : > { %s2607_s3 = sld [smem:[#allocation27_spill]]  ;;  %s2609_s18 = smov %s2115_s19 }
 0x944   : > { %p30_p4 = scmp.ge.s32.totalorder %s2606_s20, 4  }
 0x945   : > { %s2610_s19 = smov %s2607_s3 }
 0x946   :  { %32 = sbr.rel (!%p30_p4) target bundleno = 16 (0x10), region = 178 }
 0x94b   :  { %1380 = vsyncpa [#allocation3], 1 }
 0x94c   :  { %1382 = vsyncpa [#allocation3 + $0x1], 1 }
 0x94d   :  { %1383 = vsyncpa [#allocation6], 1 }
 0x94e   :  { %1385 = vsyncpa [#allocation6 + $0x1], 1 }
 0x94f   :  { %1386 = vsyncpa [#allocation9], 1 }
 0x950   :  { %1387 = vsyncpa [#allocation12], 1 }
 0x951   :  { %1388 = vsyncpa [#allocation15], 1 }
 0x952   :  { %1389 = vsyncpa [#allocation4], 1 }
 0x953   :  { %1391 = vsyncpa [#allocation4 + $0x1], 1 }

</bundles_post_ra>
